<compile_context>
chip_gen: v7x
topology: tpu7x:2x2x1
jax: 0.10.0
libtpu: 0.0.40
codegen_flags: <defaults>
</compile_context>

<pallas_src>
import jax
import jax.numpy as jnp
from jax import lax
from jax.experimental import pallas as pl
from jax.experimental.pallas import tpu as pltpu

IGNORE_INDEX = -100
TRAIN_ID_0 = 0


def _ce_kernel(logp_ref, tgt_ref, out_ref):
    # logp_ref: (C, TILE)    log-probs; classes on sublanes, pixels on lanes
    # tgt_ref:  (1, TILE)    int32 raw labels for the same pixels
    # out_ref:  (1, 1, TILE) f32 per-lane partial sums of logp[target]; the
    #           block index is the same for every pixel tile, so it stays
    #           resident in VMEM and acts as the accumulator (one HBM
    #           write-back per batch element).
    t = pl.program_id(1)

    @pl.when(t == 0)
    def _():
        out_ref[...] = jnp.zeros_like(out_ref)

    # Load in native dtype (bf16 keeps HBM traffic halved), upcast for math
    # (v5e VPU has no bf16 ops; v6e/v7x don't care).
    logp = logp_ref[...].astype(jnp.float32)              # (C, TILE)
    num_classes = logp.shape[0]

    tgt = tgt_ref[...] - TRAIN_ID_0                        # (1, TILE) int32
    # ignore_background=False: background (255 - train_id_0) -> class C-1.
    tgt = jnp.where(tgt == 255 - TRAIN_ID_0, num_classes - 1, tgt)

    # Gather logp at the target class via compare + select.  ignore_index
    # (-100) and padded lanes match no class row, so they contribute exactly 0
    # and never propagate garbage logp values from the partial edge tile.
    cls = lax.broadcasted_iota(jnp.int32, logp.shape, 0)   # class idx per sublane
    picked = jnp.where(cls == tgt, logp, 0.0)              # (C, TILE)
    # Cheap class-axis (sublane) reduce only; no cross-lane reduce in the loop.
    out_ref[0] += jnp.sum(picked, axis=0, keepdims=True)


def cross_entropy_loss(outputs, targets, *, tile_hw=32768):
    """outputs: (N, C, *spatial) log-probs (NCHW, PyTorch convention), f32 or bf16.
       targets: (N, *spatial) int class indices.
       Returns scalar mean loss (default config: weight=None, reduction='mean')."""
    N, C = outputs.shape[0], outputs.shape[1]
    assert outputs.shape[0] == targets.shape[0]
    assert outputs.shape[2:] == targets.shape[1:]

    HW = 1
    for d in outputs.shape[2:]:
        HW *= d

    # Free reshapes only — no transpose, no forced f32 upcast, no logp padding.
    logp = outputs.reshape(N, C, HW)
    tgt = targets.reshape(N, 1, HW).astype(jnp.int32)

    # Lane-dense pixel tile: as large as possible while the double-buffered
    # logp tiles stay within a conservative VMEM budget; clamped for tiny
    # inputs; always a multiple of 128.
    bytes_per = jnp.dtype(outputs.dtype).itemsize
    vmem_budget = 8 * 1024 * 1024
    tile_by_vmem = vmem_budget // (2 * C * bytes_per)
    tile = min(int(tile_hw), int(tile_by_vmem), pl.cdiv(HW, 128) * 128)
    tile = max(128, (tile // 128) * 128)

    # Pad ONLY the tiny int32 target array to a tile multiple; padded pixels
    # carry ignore_index and contribute exactly 0 in-kernel.  The large logp
    # array is left unpadded (the partial edge block is masked by the targets).
    pad = (-HW) % tile
    if pad:
        tgt = jnp.pad(tgt, ((0, 0), (0, 0), (0, pad)),
                      constant_values=IGNORE_INDEX + TRAIN_ID_0)
    n_tiles = (HW + pad) // tile

    partials = pl.pallas_call(
        _ce_kernel,
        out_shape=jax.ShapeDtypeStruct((N, 1, tile), jnp.float32),
        grid_spec=pltpu.PrefetchScalarGridSpec(
            num_scalar_prefetch=0,
            grid=(N, n_tiles),
            in_specs=[
                # (None, C, tile): batch squeezed, classes on sublanes, pixels on lanes
                pl.BlockSpec((None, C, tile), lambda n, t: (n, 0, t)),
                pl.BlockSpec((None, 1, tile), lambda n, t: (n, 0, t)),
            ],
            # Same output block for all t -> resident accumulator (P3).
            out_specs=pl.BlockSpec((1, 1, tile), lambda n, t: (n, 0, 0)),
        ),
        compiler_params=pltpu.CompilerParams(
            dimension_semantics=("parallel", "arbitrary")),
    )(logp, tgt)

    # Final tiny cross-lane reduce in XLA (N*tile floats); loss = -sum(logp[t]).
    total = jnp.sum(partials)
    # Default config (weight=None, ignore_background=False): denom = numel(targets)
    denom = jnp.float32(N * HW)
    return -total / denom


def _reference(outputs, targets):
    # Pure-JAX reference mirroring the PyTorch forward (default config).
    C = outputs.shape[1]
    t = targets.astype(jnp.int32) - TRAIN_ID_0
    t = jnp.where(t == 255 - TRAIN_ID_0, C - 1, t)
    logp = jnp.moveaxis(outputs, 1, -1).astype(jnp.float32)   # (N, ..., C)
    oh = jax.nn.one_hot(t, C, dtype=logp.dtype)
    loss = -jnp.sum(oh * logp, axis=-1)
    loss = jnp.where(t == IGNORE_INDEX, 0.0, loss)
    return jnp.sum(loss) / jnp.float32(t.size)


if __name__ == "__main__":
    key = jax.random.PRNGKey(0)
    k1, k2, k3, k4 = jax.random.split(key, 4)

    # Case 1: standard small shape with background + ignore labels.
    N, C, H, W = 2, 4, 16, 16
    logits = jax.random.normal(k1, (N, C, H, W), dtype=jnp.float32)
    outputs = jax.nn.log_softmax(logits, axis=1)          # NLLLoss expects log-probs
    targets = jax.random.randint(k2, (N, H, W), 0, C, dtype=jnp.int32)
    bg_mask = jax.random.bernoulli(k3, 0.1, (N, H, W))
    targets = jnp.where(bg_mask, 255, targets)
    ig_mask = jax.random.bernoulli(k4, 0.05, (N, H, W))
    targets = jnp.where(ig_mask, IGNORE_INDEX, targets)

    loss = jax.block_until_ready(cross_entropy_loss(outputs, targets))
    ref = jax.block_until_ready(_reference(outputs, targets))
    assert jnp.allclose(loss, ref, atol=1e-5, rtol=1e-5), (loss, ref)

    # Case 2: non-128-multiple spatial size (exercises the edge-tile path).
    H2, W2 = 10, 13
    logits2 = jax.random.normal(k1, (N, C, H2, W2), dtype=jnp.float32)
    outputs2 = jax.nn.log_softmax(logits2, axis=1)
    targets2 = jax.random.randint(k2, (N, H2, W2), 0, C, dtype=jnp.int32)
    loss2 = jax.block_until_ready(cross_entropy_loss(outputs2, targets2))
    ref2 = jax.block_until_ready(_reference(outputs2, targets2))
    assert jnp.allclose(loss2, ref2, atol=1e-5, rtol=1e-5), (loss2, ref2)

    print("KERNEL_OK")
</pallas_src>

<mosaic_0001>
module attributes {stable_mosaic.version = 11 : i64} {
  func.func @_ce_kernel(%arg0: i32, %arg1: i32, %arg2: memref<1x4x256xf32, #tpu.memory_space<vmem>>, %arg3: memref<1x1x256xi32, #tpu.memory_space<vmem>>, %arg4: memref<1x1x256xf32, #tpu.memory_space<vmem>>) attributes {dimension_semantics = [#tpu.dimension_semantics<parallel>, #tpu.dimension_semantics<arbitrary>], iteration_bounds = array<i64: 2, 1>, scalar_prefetch = 0 : i64, scratch_operands = 0 : i64, tpu.core_type = #tpu.core_type<tc>, window_params = [{transform_indices = @transform_0, window_bounds = array<i64: 1, 4, 256>}, {transform_indices = @transform_1, window_bounds = array<i64: 1, 1, 256>}, {transform_indices = @transform_2, window_bounds = array<i64: 1, 1, 256>}]} {
    %c0_i32 = arith.constant 0 : i32
    %0 = arith.cmpi eq, %arg1, %c0_i32 : i32
    %1 = arith.extui %0 : i1 to i32
    %c0_i32_0 = arith.constant 0 : i32
    %2 = arith.cmpi ne, %1, %c0_i32_0 : i32
    scf.if %2 {
      %cst_14 = arith.constant 0.000000e+00 : f32
      %26 = vector.broadcast %cst_14 : f32 to vector<1x1x256xf32>
      %c0_15 = arith.constant 0 : index
      %c0_16 = arith.constant 0 : index
      %c0_17 = arith.constant 0 : index
      %27 = vector.load %arg4[%c0_15, %c0_16, %c0_17] : memref<1x1x256xf32, #tpu.memory_space<vmem>>, vector<1x1x256xf32>
      tpu.vector_store %arg4[%c0_15, %c0_16, %c0_17], %26 {strides = array<i32>} : memref<1x1x256xf32, #tpu.memory_space<vmem>>, vector<1x1x256xf32>,
    } else {
    }
    %c0 = arith.constant 0 : index
    %c0_1 = arith.constant 0 : index
    %c0_2 = arith.constant 0 : index
    %3 = vector.load %arg2[%c0, %c0_1, %c0_2] : memref<1x4x256xf32, #tpu.memory_space<vmem>>, vector<1x4x256xf32>
    %4 = vector.shape_cast %3 : vector<1x4x256xf32> to vector<4x256xf32>
    %c0_3 = arith.constant 0 : index
    %c0_4 = arith.constant 0 : index
    %c0_5 = arith.constant 0 : index
    %5 = vector.load %arg3[%c0_3, %c0_4, %c0_5] : memref<1x1x256xi32, #tpu.memory_space<vmem>>, vector<1x1x256xi32>
    %6 = vector.shape_cast %5 : vector<1x1x256xi32> to vector<1x256xi32>
    %c0_i32_6 = arith.constant 0 : i32
    %7 = vector.broadcast %c0_i32_6 : i32 to vector<1x256xi32>
    %8 = arith.subi %6, %7 : vector<1x256xi32>
    %c255_i32 = arith.constant 255 : i32
    %9 = vector.broadcast %c255_i32 : i32 to vector<1x256xi32>
    %10 = arith.cmpi eq, %8, %9 : vector<1x256xi32>
    %c3_i32 = arith.constant 3 : i32
    %11 = vector.broadcast %c3_i32 : i32 to vector<1x256xi32>
    %12 = arith.select %10, %11, %8 : vector<1x256xi1>, vector<1x256xi32>
    %13 = tpu.iota {dimensions = array<i32: 0>} : vector<4x256xi32>
    %14 = vector.broadcast %12 : vector<1x256xi32> to vector<4x256xi32>
    %15 = arith.cmpi eq, %13, %14 : vector<4x256xi32>
    %cst = arith.constant 0.000000e+00 : f32
    %16 = vector.broadcast %cst : f32 to vector<4x256xf32>
    %17 = arith.select %15, %4, %16 : vector<4x256xi1>, vector<4x256xf32>
    %c0_7 = arith.constant 0 : index
    %c0_8 = arith.constant 0 : index
    %c0_9 = arith.constant 0 : index
    %18 = vector.load %arg4[%c0_7, %c0_8, %c0_9] : memref<1x1x256xf32, #tpu.memory_space<vmem>>, vector<1x1x256xf32>
    %19 = vector.shape_cast %18 : vector<1x1x256xf32> to vector<1x256xf32>
    %cst_10 = arith.constant dense<0.000000e+00> : vector<256xf32>
    %20 = vector.multi_reduction <add>, %17, %cst_10 [0] : vector<4x256xf32> to vector<256xf32>
    %21 = vector.shape_cast %20 : vector<256xf32> to vector<1x256xf32>
    %22 = arith.addf %19, %21 : vector<1x256xf32>
    %c0_11 = arith.constant 0 : index
    %c0_12 = arith.constant 0 : index
    %c0_13 = arith.constant 0 : index
    %23 = vector.load %arg4[%c0_11, %c0_12, %c0_13] : memref<1x1x256xf32, #tpu.memory_space<vmem>>, vector<1x1x256xf32>
    %24 = vector.shape_cast %23 : vector<1x1x256xf32> to vector<1x256xf32>
    %25 = vector.shape_cast %22 : vector<1x256xf32> to vector<1x1x256xf32>
    tpu.vector_store %arg4[%c0_11, %c0_12, %c0_13], %25 {strides = array<i32>} : memref<1x1x256xf32, #tpu.memory_space<vmem>>, vector<1x1x256xf32>,
    return
  }
  func.func @transform_0(%arg0: i32, %arg1: i32) -> (i32, i32, i32) {
    %c0_i32 = arith.constant 0 : i32
    %c0_i32_0 = arith.constant 0 : i32
    return %arg0, %c0_i32, %arg1 : i32, i32, i32
  }
  func.func @transform_1(%arg0: i32, %arg1: i32) -> (i32, i32, i32) {
    %c0_i32 = arith.constant 0 : i32
    %c0_i32_0 = arith.constant 0 : i32
    return %arg0, %c0_i32, %arg1 : i32, i32, i32
  }
  func.func @transform_2(%arg0: i32, %arg1: i32) -> (i32, i32, i32) {
    %c0_i32 = arith.constant 0 : i32
    %c0_i32_0 = arith.constant 0 : i32
    %c0_i32_1 = arith.constant 0 : i32
    return %arg0, %c0_i32, %c0_i32_0 : i32, i32, i32
  }
}

</mosaic_0001>

<bundles_post_ra>
// kernel: tpu_custom_call.1
= control target key start
LH: loop header
LB: loop body
LE: loop exit
PB: predicated region body
PF: predicated region fallthrough
CT: control target
= control target key end

     0   :  { %7 = vsyncpa [#allocation3], 0  ;;  %s901_s0 = inlined_call_operand.hbm [shape: f32[2,4,256], index: 0, kind: input, shape index: {}]   ;;  %s902_s1 = inlined_call_operand.hbm [shape: s32[2,1,256], index: 1, kind: input, shape index: {}]   ;;  %s903_s2 = inlined_call_operand.hbm [shape: f32[2,1,256], index: 2, kind: output, shape index: {}]  }
   0x1   :  { %9 = vsyncpa [#allocation3 + $0x1], 0 }
   0x2   :  { %10 = vsyncpa [#allocation6], 0 }
   0x3   :  { %12 = vsyncpa [#allocation6 + $0x1], 0 }
   0x4   :  { %13 = vsyncpa [#allocation4], 0 }
   0x5   :  { %15 = vsyncpa [#allocation4 + $0x1], 0  ;;  %s672_s9 = smov 0   ;;  %s674_s10 = smov 0  }
   0x6   :  { %s676_s11 = smov 0   ;;  %s678_s12 = smov 0  }
   0x7   :  { %s680_s13 = smov 0   ;;  %s682_s14 = smov 0  }
   0x8 LB: > { %s412_s15 = sadd.s32 4294967295, %s650_s14   ;;  %s413_s16 = sadd.s32 4294967294, %s650_s14   ;;  %s650_s14 = sphi %s682_s14, %s21_s14   ;;  %s646_s13 = sphi %s680_s13, %s925_s13   ;;  %s642_s12 = sphi %s678_s12, %s924_s12   ;;  %s638_s11 = sphi %s676_s11, %s923_s11   ;;  %s634_s10 = sphi %s674_s10, %s922_s10   ;;  %s630_s9 = sphi %s672_s9, %s921_s9  }
   0x9   : > { %s33_s17 = sadd.s32 1, %s646_s13  ;;  %s42_s18 = sadd.s32 1, %s638_s11 }
   0xa   : > { %p35_p0 = scmp.ge.s32.totalorder %s33_s17, 2  ;;  %p49_p1 = scmp.ne.s32.totalorder %s638_s11, %s634_s10 }
   0xb   : > { %p50_p2 = scmp.eq.s32.totalorder %s650_s14, 0  ;;  %p55_p3 = scmp.ne.s32.totalorder %s634_s10, %s630_s9 }
   0xc   : > { %s927_s17 = smov (%p35_p0, %s33_s17), 0  ;;  %p56_p5 = scmp.eq.s32.totalorder %s412_s15, 0 }
   0xd   : > { %p713_p4 = por %p50_p2, %p49_p1  ;;  %s37_s20 = ssub.s32 %s646_s13, %s927_s17 }
   0xe   : > { %p107_p6 = scmp.eq.s32.totalorder %s412_s15, 1  ;;  %p40_p7 = scmp.eq.s32.totalorder %s37_s20, 0 }
   0xf   : > { %p719_p8 = por %p56_p5, %p55_p3  ;;  %p113_p10 = scmp.eq.s32.totalorder %s413_s16, 1 }
  0x10   : > { %p723_p9 = por %p107_p6, %p49_p1  ;;  %p451_p13 = scmp.lt.s32.totalorder %s650_s14, 2 }
  0x11   : > { %s907_s21 = scalar_select %p719_p8, 1, 0 }
  0x12   : > { %s908_s22 = scalar_select %p723_p9, 1, 0 }
  0x13   : > { %s728_s23 = scalar_select %p40_p7, %s638_s11, %s42_s18  }
  0x14   : > { %p730_p11 = por %p113_p10, %p55_p3  ;;  %s737_s25 = sand.u32 1, %s638_s11  }
  0x15   : > { %s416_s26 = sshll.u32 %s737_s25, 3  ;;  %s431_s27 = sshll.u32 %s646_s13, 7 }
  0x16   : > { %s909_s24 = scalar_select %p730_p11, 1, 0 }
  0x17   : > { %s744_s30 = scalar_lea.hbm %s901_s0, %s431_s27  ;;  %s137_s3 = scalar_lea.vmem [#allocation2], %s416_s26 }
  0x18   : > { %s147_s4 = sshll.u32 %s137_s3, 4  ;;  %p750_p0 = pnand %p451_p13, %p713_p4  ;;  %s746_s4 = int_to_ptr.vmem [resolvable:$true] %s147_s4 }
  0x19   : > { %s134_s6 = scalar_lea.sflag [#allocation3], %s737_s25  ;;  %s504_s7 = scalar_lea.hbm %s744_s30, 128 }
  0x1a   : > { %p505_p3 = scmp.ne.s32.totalorder %s744_s30, %s504_s7  ;;  %p506_p5 = pneg %p750_p0 }
  0x1b   : > { %s509_s16 = scalar_lea.hbm %s901_s0, 256  ;;  %p510_p4 = scmp.lt.u32.totalorder %s744_s30, %s901_s0 }
  0x1c   : > { %p507_p6 = pnand %p506_p5, %p505_p3  ;;  %p511_p10 = scmp.lt.u32.totalorder %s509_s16, %s504_s7 }
  0x1d   : > { %p513_p12 = scmp.lt.u32.totalorder %s504_s7, %s744_s30 }
  0x1e   : > { %p508_p7 = pneg %p507_p6  ;;  %p512_p13 = por %p511_p10, %p510_p4 }
  0x20   : > { %p514_p1 = por %p513_p12, %p512_p13 }
  0x22   : > { %p515_p2 = pnand %p514_p1, %p508_p7 }
  0x24   : > { %518 = shalt.err (!%p515_p2)
}
  0x25   : > { %s519_s20 = scalar_lea.vmem %s746_s4, 128  ;;  %s652_s26 = smov [#allocation2]  }
  0x26   : > { %p520_p3 = scmp.ne.s32.totalorder %s746_s4, %s519_s20  ;;  %s524_s27 = sshll.u32 %s652_s26, 4  ;;  %s525_s27 = int_to_ptr.vmem [resolvable:$false] %s524_s27 }
  0x27   : > { %s526_s28 = scalar_lea.vmem %s525_s27, 256  ;;  %p527_p9 = scmp.lt.s32.totalorder %s746_s4, %s525_s27 }
  0x28   : > { %p522_p6 = pnand %p520_p3, %p506_p5  ;;  %p528_p4 = scmp.lt.s32.totalorder %s526_s28, %s519_s20 }
  0x2a   : > { %p523_p11 = pneg %p522_p6  ;;  %p529_p10 = por %p528_p4, %p527_p9 }
  0x2c   : > { %p530_p12 = pnand %p529_p10, %p523_p11 }
  0x2e   : > { %533 = shalt.err (!%p530_p12)
}
  0x2f   : > { %443 = dma.hbm_to_vmem [thread:$0]  (!%p750_p0), %s744_s30, 128, %s746_s4, %s134_s6  }
  0x30   : > { %p911_p1 = scmp.lt.s32.totalorder %s650_s14, 3  ;;  %p912_p2 = scmp.ge.s32.totalorder %s650_s14, 1 }
  0x31   : > { %s419_s3 = sshll.u32 %s737_s25, 1  ;;  %s432_s7 = sshll.u32 %s646_s13, 5 }
  0x32   : > { %p786_p7 = pnand %p912_p2, %p911_p1  ;;  %s795_s16 = scalar_lea.hbm %s902_s1, %s432_s7 }
  0x33   : > { %s158_s18 = scalar_lea.vmem [#allocation5], %s419_s3  ;;  %s155_s30 = scalar_lea.sflag [#allocation6], %s737_s25 }
  0x34   : > { %s913_s29 = scalar_select %p786_p7, 1, 0 }
  0x35   : > { %s168_s19 = sshll.u32 %s158_s18, 4  ;;  %s534_s4 = scalar_lea.hbm %s795_s16, 32  ;;  %s169_s19 = int_to_ptr.vmem [resolvable:$true] %s168_s19 }
  0x36   : > { %p535_p9 = scmp.ne.s32.totalorder %s795_s16, %s534_s4  ;;  %s539_s26 = scalar_lea.hbm %s902_s1, 64 }
  0x37   : > { %p540_p3 = scmp.lt.u32.totalorder %s795_s16, %s902_s1  ;;  %p541_p6 = scmp.lt.u32.totalorder %s539_s26, %s534_s4 }
  0x38   : > { %p537_p11 = pnand %p535_p9, %p506_p5  ;;  %p543_p10 = scmp.lt.u32.totalorder %s534_s4, %s795_s16 }
  0x39   : > { %p542_p4 = por %p541_p6, %p540_p3 }
  0x3a   : > { %p538_p13 = pneg %p537_p11 }
  0x3b   : > { %p544_p12 = por %p543_p10, %p542_p4 }
  0x3d   : > { %p545_p1 = pnand %p544_p12, %p538_p13 }
  0x3f   : > { %548 = shalt.err (!%p545_p1)
}
  0x40   : > { %s549_s25 = scalar_lea.vmem %s169_s19, 32  ;;  %s653_s3 = smov [#allocation5]  }
  0x41   : > { %p550_p2 = scmp.ne.s32.totalorder %s169_s19, %s549_s25  ;;  %s554_s7 = sshll.u32 %s653_s3, 4  ;;  %s555_s7 = int_to_ptr.vmem [resolvable:$false] %s554_s7 }
  0x42   : > { %s556_s8 = scalar_lea.vmem %s555_s7, 64  ;;  %p557_p8 = scmp.lt.s32.totalorder %s169_s19, %s555_s7 }
  0x43   : > { %p552_p9 = pnand %p550_p2, %p506_p5  ;;  %p558_p7 = scmp.lt.s32.totalorder %s556_s8, %s549_s25 }
  0x45   : > { %p553_p11 = pneg %p552_p9  ;;  %p559_p3 = por %p558_p7, %p557_p8 }
  0x47   : > { %p560_p6 = pnand %p559_p3, %p553_p11 }
  0x49   : > { %563 = shalt.err (!%p560_p6)
}
  0x4a   : > { %446 = dma.hbm_to_vmem [thread:$0]  (!%p750_p0), %s795_s16, 32, %s169_s19, %s155_s30  }
  0x4b   : > { %p914_p13 = scmp.ne.s32.totalorder %s913_s29, 0 }
  0x4c   : > { %s820_s15 = sand.u32 (!%p914_p13), 1, %s634_s10   ;;  %p915_p5 = scmp.ne.s32.totalorder (!%p914_p13), %s907_s21, 0 }
  0x4d   : > { %177 = sbr.rel (%p914_p13) target bundleno = 133 (0x85), region = 28  ;;  %s423_s18 = sshll.u32 (!%p914_p13), %s820_s15, 3 }
  0x4e   : > { %s180_s4 = scalar_lea.sflag (!%p914_p13), [#allocation3], %s820_s15  ;;  %s183_s6 = scalar_lea.vmem (!%p914_p13), [#allocation2], %s423_s18 }
  0x54   : > { %617 = dma.done.wait (%p915_p5), %s180_s4, 128  }
  0x55   : > { %619 = vsyncadd (%p915_p5), %s180_s4, 4294967168  ;;  %s424_s5 = sshll.u32 %s820_s15, 1  ;;  %s189_s29 = scalar_lea.sflag [#allocation6], %s820_s15 }
  0x56   : > { %s192_s16 = scalar_lea.vmem [#allocation5], %s424_s5 }
  0x57   : > { %621 = dma.done.wait (%p915_p5), %s189_s29, 32  }
  0x58   : > { %623 = vsyncadd (%p915_p5), %s189_s29, 4294967264  ;;  %v224_v0 = vlaneseq  ;;  %s838_s19 = scalar_lea.vmem [#allocation7], %s424_s5  ;;  %v654_v3 = vmov 0.0   ;;  %v229_v6 = vld [vmem:[%s183_s6] sm:$0xff]  ;;  %v230_v7 = vld [vmem:[%s192_s16] sm:$0x3] }
  0x59   : > { %vm231_vm1 = vcmp.eq.s32.totalorder %v230_v7, 255  ;;  %v246_v9 = vcombine.high %v229_v6, %v229_v6  ;;  %vm251_vm2 = vcmask 1043456   ;;  %v655_v20 = vmov 1966171168   ;;  %s433_s21 = sshll.u32 %s642_s12, 5  ;;  %s305_s30 = sshll.u32 %s838_s19, 4  ;;  %s851_s30 = int_to_ptr.vmem [resolvable:$true] %s305_s30 }
  0x5a   : > { %vm834_vm0 = vcmp.lt.s32.totalorder %v224_v0, 256  ;;  %v234_v2 = vshrl.u32 %v224_v0, 7  ;;  %v232_v8 = vsel %vm231_vm1, 3, %v230_v7  ;;  %v270_v21 = vunpack.c.l.s4 %v655_v20  ;;  %s849_s27 = scalar_lea.hbm %s903_s2, %s433_s21  ;;  %s291_s28 = scalar_lea.sflag [#allocation4], %s820_s15 }
  0x5b   : > { %228 = vst.msk [vmem:[%s838_s19] sm:$0x3] %vm834_vm0, %v654_v3  ;;  %s564_s25 = scalar_lea.vmem %s851_s30, 32  ;;  %p918_p0 = scmp.ne.s32.totalorder %s908_s22, 0 }
  0x5c   : > { %v237_v4 = vsub.s32 0, %v234_v2  ;;  %v241_v5 = vsub.s32 1, %v234_v2  ;;  %v271_v26 = vunpack.c.0.s8 %v270_v21  ;;  %p565_p8 = scmp.ne.s32.totalorder %s851_s30, %s564_s25  ;;  %s656_s12 = smov [#allocation7]  }
  0x5d   : > { %s568_s3 = sshll.u32 %s656_s12, 4  ;;  %s569_s3 = int_to_ptr.vmem [resolvable:$false] %s568_s3 }
  0x5e   : > { %v238_v10 = vrot.slane %v232_v8, %v237_v4  ;;  %v242_v11 = vrot.slane %v232_v8, %v241_v5  ;;  %v274_v31 = vsub.s32 %v271_v26, %v234_v2  ;;  %p566_p7 = pnand %p565_p8, %p918_p0  ;;  %s570_s7 = scalar_lea.vmem %s569_s3, 64 }
  0x5f   : > { %p571_p10 = scmp.lt.s32.totalorder %s851_s30, %s569_s3  ;;  %p572_p12 = scmp.lt.s32.totalorder %s570_s7, %s564_s25 }
  0x60   : > { %vm243_vm3 = vcmp.eq.s32.totalorder %v234_v2, %v238_v10  ;;  %vm244_vm4 = vcmp.eq.s32.totalorder %v234_v2, %v242_v11  ;;  %p567_p4 = pneg %p566_p7 }
  0x61   : > { %v248_v12 = vsel %vm243_vm3, %v229_v6, 0.0  ;;  %v249_v13 = vsel %vm244_vm4, %v246_v9, 0.0  ;;  %p573_p1 = por %p572_p12, %p571_p10 }
  0x62   : > { %v252_v14 = vsel %vm251_vm2, %v248_v12, 0.0  ;;  %v259_v15 = vsel %vm251_vm2, %v249_v13, 0.0  ;;  %v250_v34 = vld [vmem:[%s838_s19] sm:$0x3] }
  0x63   : > { %v253_v16 = vrot.slane %v252_v14, 4  ;;  %v260_v17 = vrot.slane %v259_v15, 4  ;;  %p574_p2 = pnand %p573_p1, %p567_p4 }
  0x65   : > { %v254_v18 = vadd.f32 %v253_v16, %v252_v14  ;;  %v261_v19 = vadd.f32 %v260_v17, %v259_v15 }
  0x67   : > { %v255_v22 = vrot.slane %v254_v18, 2  ;;  %v262_v23 = vrot.slane %v261_v19, 2 }
  0x69   : > { %v256_v24 = vadd.f32 %v255_v22, %v254_v18  ;;  %v263_v25 = vadd.f32 %v262_v23, %v261_v19 }
  0x6b   : > { %v257_v27 = vrot.slane %v256_v24, 1  ;;  %v264_v28 = vrot.slane %v263_v25, 1 }
  0x6d   : > { %v258_v29 = vadd.f32 %v257_v27, %v256_v24  ;;  %v265_v30 = vadd.f32 %v264_v28, %v263_v25 }
  0x6f   : > { %v268_v32 = vcombine.low %v258_v29, %v265_v30 }
  0x71   : > { %v275_v33 = vrot.slane %v268_v32, %v274_v31 }
  0x73   : > { %v282_v35 = vrot.slane %v275_v33, %v274_v31 }
  0x75   : > { %v284_v36 = vadd.f32 %v282_v35, %v250_v34 }
  0x77   : > { %289 = vst.msk [vmem:[%s838_s19] sm:$0x3] %vm834_vm0, %v284_v36 }
  0x78   : > { %577 = shalt.err (!%p574_p2)
}
  0x79   : > { %s578_s8 = scalar_lea.hbm %s849_s27, 32  ;;  %s582_s4 = scalar_lea.hbm %s903_s2, 64 }
  0x7a   : > { %p579_p9 = scmp.ne.s32.totalorder %s849_s27, %s578_s8  ;;  %p583_p6 = scmp.lt.u32.totalorder %s849_s27, %s903_s2 }
  0x7b   : > { %p584_p13 = scmp.lt.u32.totalorder %s582_s4, %s578_s8  ;;  %p586_p8 = scmp.lt.u32.totalorder %s578_s8, %s849_s27 }
  0x7c   : > { %p580_p11 = pnand %p579_p9, %p918_p0 }
  0x7d   : > { %p585_p5 = por %p584_p13, %p583_p6 }
  0x7e   : > { %p581_p3 = pneg %p580_p11 }
  0x7f   : > { %p587_p7 = por %p586_p8, %p585_p5 }
  0x81   : > { %p588_p4 = pnand %p587_p7, %p581_p3 }
  0x83   : > { %591 = shalt.err (!%p588_p4)
}
  0x84   : > { %438 = dma.vmem_to_hbm [thread:$0]  (%p918_p0), %s851_s30, 32, %s849_s27, %s291_s28  }
  0x85 PF: > { %s317_s29 = sand.u32 1, %s630_s9   ;;  %p919_p10 = scmp.ne.s32.totalorder %s909_s24, 0 }
  0x86   : > { %p920_p12 = scmp.ge.s32.totalorder %s650_s14, 2  ;;  %s318_s16 = scalar_lea.sflag [#allocation4], %s317_s29 }
  0x88   : > { %p448_p1 = pnand %p920_p12, %p919_p10 }
  0x8a   : > { %625 = dma.done.wait (!%p448_p1), %s318_s16, 32  }
  0x8b   : > { %627 = vsyncadd (!%p448_p1), %s318_s16, 4294967264  ;;  %s21_s14 = sadd.s32 1, %s650_s14   ;;  %s921_s9 = smov %s634_s10 }
  0x8c   : > { %p18_p2 = scmp.ge.s32.totalorder %s21_s14, 4   ;;  %s922_s10 = smov %s638_s11 }
  0x8d   : > { %s923_s11 = smov %s728_s23  ;;  %s924_s12 = smov %s646_s13 }
  0x8e   : > { %s925_s13 = smov %s927_s17  ;;  %20 = sbr.rel (!%p18_p2) target bundleno = 8 (0x8), region = 90 }
  0x95   :  { %323 = vsyncpa [#allocation3], 1 }
  0x96   :  { %325 = vsyncpa [#allocation3 + $0x1], 1 }
  0x97   :  { %326 = vsyncpa [#allocation6], 1 }
  0x98   :  { %328 = vsyncpa [#allocation6 + $0x1], 1 }
  0x99   :  { %329 = vsyncpa [#allocation4], 1 }
  0x9a   :  { %331 = vsyncpa [#allocation4 + $0x1], 1 }

</bundles_post_ra>
